<compile_context>
chip_gen: v7x
topology: tpu7x:2x2x1
jax: 0.10.0
libtpu: 0.0.40
codegen_flags: <defaults>
</compile_context>

<pallas_src>
import functools

import jax
import jax.numpy as jnp
from jax.experimental import pallas as pl
from jax.experimental.pallas import tpu as pltpu

BN_EPS = 1e-5


# --------------------------------------------------------------------------
# Hardware-aware sizing helpers
# --------------------------------------------------------------------------
def _vmem_capacity():
    try:
        return int(pltpu.get_tpu_info().vmem_capacity_bytes)
    except Exception:
        return 64 * 1024 * 1024          # conservative (v7x per-TC) default


def _divisors(n):
    ds = set()
    i = 1
    while i * i <= n:
        if n % i == 0:
            ds.add(i)
            ds.add(n // i)
        i += 1
    return sorted(ds)


def _choose_blocks(n, hw, c_in, c_out, budget_bytes):
    """Pick (Nb, TS): batch-block and spatial tile for the tiled fallback.

    Always respects `budget_bytes` assuming double-buffered f32 x- and
    out-blocks; prefers lane-dense (multiple of 128) spatial tiles; grows the
    batch block only when the whole feature map fits in one tile (small maps).
    """
    bytes_per_spatial = 2 * 4 * max(c_in + c_out, 1)      # dbl-buffered x+out
    cap = max(budget_bytes // bytes_per_spatial, 1)       # max Nb * TS elems

    divs = _divisors(hw)
    lane_divs = [d for d in divs if d % 128 == 0 and d <= cap]
    if lane_divs:
        ts = max(lane_divs)
    else:
        fit = [d for d in divs if d <= cap]
        ts = max(fit) if fit else 1

    nb = 1
    if ts == hw:                                           # small map: batch-block
        for d in _divisors(n):
            if d * ts <= cap:
                nb = max(nb, d)
    return nb, ts


# --------------------------------------------------------------------------
# Kernels
# --------------------------------------------------------------------------
def _fused_kernel(x_ref, w_ref, gamma_ref, beta_ref, out_ref):
    """Single-shot path: x fully resident in VMEM; ReLU + 1x1 conv + BN."""
    a = jnp.maximum(x_ref[...], 0.0).astype(w_ref.dtype)          # (N, C_in, HW)
    n = a.shape[0]
    wb = jnp.broadcast_to(w_ref[...], (n,) + w_ref.shape)         # (N, C_out, C_in)
    y = jnp.einsum("noc,nct->not", wb, a,
                   preferred_element_type=jnp.float32)            # (N, C_out, HW)

    cnt = jnp.float32(y.shape[0] * y.shape[2])
    s = jnp.sum(jnp.sum(y, axis=2, keepdims=True), axis=0, keepdims=True)
    q = jnp.sum(jnp.sum(y * y, axis=2, keepdims=True), axis=0, keepdims=True)
    mean = s / cnt
    var = jnp.maximum(q / cnt - mean * mean, 0.0)                  # biased var
    inv = jax.lax.rsqrt(var + BN_EPS)
    scale = gamma_ref[...].reshape(1, -1, 1) * inv
    bias = beta_ref[...].reshape(1, -1, 1) - mean * scale
    out_ref[...] = (y * scale + bias).astype(out_ref.dtype)


def _stats_kernel(x_ref, w_ref, sum_ref, ssq_ref):
    """Pass 1 (tiled): per-batch-block partial sum / sumsq of y = W @ relu(x)."""
    t = pl.program_id(1)

    a = jnp.maximum(x_ref[...], 0.0).astype(w_ref.dtype)          # (Nb, C_in, TS)
    nb = a.shape[0]
    wb = jnp.broadcast_to(w_ref[...], (nb,) + w_ref.shape)        # (Nb, C_out, C_in)
    y = jnp.einsum("boc,bct->bot", wb, a,
                   preferred_element_type=jnp.float32)            # (Nb, C_out, TS)

    ps = jnp.sum(jnp.sum(y, axis=2, keepdims=True), axis=0, keepdims=True)
    pq = jnp.sum(jnp.sum(y * y, axis=2, keepdims=True), axis=0, keepdims=True)

    @pl.when(t == 0)
    def _init():
        sum_ref[...] = ps
        ssq_ref[...] = pq

    @pl.when(t != 0)
    def _acc():
        sum_ref[...] += ps
        ssq_ref[...] += pq


def _apply_kernel(x_ref, w_ref, scale_ref, bias_ref, out_ref):
    """Pass 2 (tiled): recompute y = W @ relu(x) and apply folded BN scale/bias."""
    a = jnp.maximum(x_ref[...], 0.0).astype(w_ref.dtype)          # (Nb, C_in, TS)
    nb = a.shape[0]
    wb = jnp.broadcast_to(w_ref[...], (nb,) + w_ref.shape)
    y = jnp.einsum("boc,bct->bot", wb, a,
                   preferred_element_type=jnp.float32)            # (Nb, C_out, TS)
    scale = scale_ref[...].reshape(1, -1, 1)
    bias = bias_ref[...].reshape(1, -1, 1)
    out_ref[...] = (y * scale + bias).astype(out_ref.dtype)


# --------------------------------------------------------------------------
# Wrapper
# --------------------------------------------------------------------------
@functools.partial(jax.jit,
                   static_argnames=("stride", "matmul_dtype", "force_tiled"))
def relu_conv_bn(x, w, gamma, beta, *, stride=1, matmul_dtype=None,
                 force_tiled=False):
    """x: (N, C_in, H, W) NCHW.  w: (C_out, C_in, 1, 1) PyTorch conv weight.
    gamma/beta: (C_out,) BatchNorm affine params (training-mode statistics)."""
    N, C_in, H, W = x.shape
    C_out, wc_in, kh, kw = w.shape
    assert wc_in == C_in and kh == 1 and kw == 1, "only 1x1 conv supported"

    if stride > 1:
        # 1x1 stride-s conv == pixel subsample.
        x = x[:, :, ::stride, ::stride]
    H2, W2 = x.shape[2], x.shape[3]
    HW = H2 * W2

    w2 = w.reshape(C_out, C_in)
    if matmul_dtype is not None:                 # e.g. jnp.bfloat16 on v6e/v7x
        w2 = w2.astype(matmul_dtype)
    g2 = gamma.reshape(C_out, 1).astype(jnp.float32)
    b2 = beta.reshape(C_out, 1).astype(jnp.float32)

    x3 = x.reshape(N, C_in, HW)                  # free reshape, NCHW-contiguous

    # Generation-aware budgets derived from physical VMEM.
    cap = _vmem_capacity()
    vmem_limit = int(min(cap * 0.85, 100 * 1024 * 1024))
    tile_budget = int(min(max(cap // 4, 4 << 20), 32 << 20))

    # -------- fused single-call path (x resident; one HBM read of x) --------
    x_in_bytes = x3.size * x3.dtype.itemsize
    x_f32_bytes = x3.size * 4
    y_bytes = N * C_out * HW * 4
    out_bytes = N * C_out * HW * x.dtype.itemsize
    fused_bytes = x_in_bytes + x_f32_bytes + 2 * y_bytes + out_bytes
    use_fused = (not force_tiled) and fused_bytes <= int(cap * 0.5)

    vmem_spec = pl.BlockSpec(memory_space=pltpu.MemorySpace.VMEM)

    if use_fused:
        out3 = pl.pallas_call(
            _fused_kernel,
            in_specs=[vmem_spec, vmem_spec, vmem_spec, vmem_spec],
            out_specs=vmem_spec,
            out_shape=jax.ShapeDtypeStruct((N, C_out, HW), x.dtype),
            compiler_params=pltpu.CompilerParams(vmem_limit_bytes=vmem_limit),
        )(x3, w2, g2, b2)
        return out3.reshape(N, C_out, H2, W2)

    # -------- tiled two-pass fallback --------
    Nb, TS = _choose_blocks(N, HW, C_in, C_out, tile_budget)
    NB = N // Nb
    grid = (NB, HW // TS)

    x_spec = pl.BlockSpec((Nb, C_in, TS), lambda b, t: (b, 0, t))
    w_spec = pl.BlockSpec((C_out, C_in), lambda b, t: (0, 0))
    vec_spec = pl.BlockSpec((C_out, 1), lambda b, t: (0, 0))
    part_spec = pl.BlockSpec((1, C_out, 1), lambda b, t: (b, 0, 0))

    # Pass 1: per-batch-block partial sums (batch axis "parallel" -> megacore).
    s, q = pl.pallas_call(
        _stats_kernel,
        grid=grid,
        in_specs=[x_spec, w_spec],
        out_specs=[part_spec, part_spec],
        out_shape=(jax.ShapeDtypeStruct((NB, C_out, 1), jnp.float32),
                   jax.ShapeDtypeStruct((NB, C_out, 1), jnp.float32)),
        compiler_params=pltpu.CompilerParams(
            dimension_semantics=("parallel", "arbitrary"),
            vmem_limit_bytes=vmem_limit),
    )(x3, w2)

    # Fold BN into per-channel scale / bias (tiny, plain JAX).
    count = jnp.float32(N * HW)
    s_tot = jnp.sum(s, axis=0)                                     # (C_out, 1)
    q_tot = jnp.sum(q, axis=0)
    mean = s_tot / count
    var = jnp.maximum(q_tot / count - mean * mean, 0.0)            # biased var
    inv = jax.lax.rsqrt(var + BN_EPS)
    scale = g2 * inv
    bias = b2 - mean * scale

    # Pass 2: recompute y and normalize (fully parallel grid).
    out3 = pl.pallas_call(
        _apply_kernel,
        grid=grid,
        in_specs=[x_spec, w_spec, vec_spec, vec_spec],
        out_specs=pl.BlockSpec((Nb, C_out, TS), lambda b, t: (b, 0, t)),
        out_shape=jax.ShapeDtypeStruct((N, C_out, HW), x.dtype),
        compiler_params=pltpu.CompilerParams(
            dimension_semantics=("parallel", "parallel"),
            vmem_limit_bytes=vmem_limit),
    )(x3, w2, scale, bias)

    return out3.reshape(N, C_out, H2, W2)


# --------------------------------------------------------------------------
# Pure-JAX reference (PyTorch ReLUConvBN 1x1 semantics, training-mode BN)
# --------------------------------------------------------------------------
def _reference(x, w, gamma, beta, stride=1):
    C_out = w.shape[0]
    xr = jnp.maximum(x, 0.0)
    if stride > 1:
        xr = xr[:, :, ::stride, ::stride]
    w2 = w.reshape(C_out, -1)
    y = jnp.einsum("nchw,oc->nohw", xr, w2)
    mean = jnp.mean(y, axis=(0, 2, 3), keepdims=True)
    var = jnp.mean((y - mean) ** 2, axis=(0, 2, 3), keepdims=True)
    return (gamma.reshape(1, -1, 1, 1) * (y - mean) * jax.lax.rsqrt(var + BN_EPS)
            + beta.reshape(1, -1, 1, 1))


if __name__ == "__main__":
    key = jax.random.PRNGKey(0)
    N, C_in, H, W = 2, 4, 16, 16
    C_out = 8

    kx, kw_ = jax.random.split(key, 2)
    x = jax.random.normal(kx, (N, C_in, H, W), dtype=jnp.float32)
    # PyTorch Conv2d weight shape: (C_out, C_in, 1, 1), bias=False.
    w = 0.1 * jax.random.normal(kw_, (C_out, C_in, 1, 1), dtype=jnp.float32)
    # BatchNorm2d affine params at PyTorch init defaults.
    gamma = jnp.ones((C_out,), dtype=jnp.float32)
    beta = jnp.zeros((C_out,), dtype=jnp.float32)

    # Fused VMEM-resident path (stride=1).
    ref1 = _reference(x, w, gamma, beta, stride=1)
    out_fused = jax.block_until_ready(relu_conv_bn(x, w, gamma, beta, stride=1))
    assert out_fused.shape == (N, C_out, H, W)
    assert jnp.allclose(out_fused, ref1, atol=1e-4, rtol=1e-4), \
        float(jnp.max(jnp.abs(out_fused - ref1)))

    # Tiled two-pass fallback path on the same data.
    out_tiled = jax.block_until_ready(
        relu_conv_bn(x, w, gamma, beta, stride=1, force_tiled=True))
    assert jnp.allclose(out_tiled, ref1, atol=1e-4, rtol=1e-4), \
        float(jnp.max(jnp.abs(out_tiled - ref1)))

    # Stride-2 reduction-cell case.
    ref2 = _reference(x, w, gamma, beta, stride=2)
    out_s2 = jax.block_until_ready(relu_conv_bn(x, w, gamma, beta, stride=2))
    assert out_s2.shape == ref2.shape
    assert jnp.allclose(out_s2, ref2, atol=1e-4, rtol=1e-4), \
        float(jnp.max(jnp.abs(out_s2 - ref2)))

    print("KERNEL_OK")
</pallas_src>

<mosaic_0001>
module attributes {stable_mosaic.version = 11 : i64} {
  func.func @_fused_kernel(%arg0: memref<2x4x256xf32, #tpu.memory_space<vmem>>, %arg1: memref<8x4xf32, #tpu.memory_space<vmem>>, %arg2: memref<8x1xf32, #tpu.memory_space<vmem>>, %arg3: memref<8x1xf32, #tpu.memory_space<vmem>>, %arg4: memref<2x8x256xf32, #tpu.memory_space<vmem>>) attributes {dimension_semantics = [], scalar_prefetch = 0 : i64, scratch_operands = 0 : i64, tpu.core_type = #tpu.core_type<tc>} {
    %c0 = arith.constant 0 : index
    %c0_0 = arith.constant 0 : index
    %c0_1 = arith.constant 0 : index
    %0 = vector.load %arg0[%c0, %c0_0, %c0_1] : memref<2x4x256xf32, #tpu.memory_space<vmem>>, vector<2x4x256xf32>
    %cst = arith.constant 0.000000e+00 : f32
    %1 = vector.broadcast %cst : f32 to vector<2x4x256xf32>
    %2 = arith.maximumf %0, %1 : vector<2x4x256xf32>
    %c0_2 = arith.constant 0 : index
    %c0_3 = arith.constant 0 : index
    %3 = vector.load %arg1[%c0_2, %c0_3] : memref<8x4xf32, #tpu.memory_space<vmem>>, vector<8x4xf32>
    %4 = vector.shape_cast %3 : vector<8x4xf32> to vector<1x8x4xf32>
    %5 = vector.broadcast %4 : vector<1x8x4xf32> to vector<2x8x4xf32>
    "tpu.trace_start"() <{level = 10 : i32, message = "noc,nct->not"}> : () -> ()
    %cst_4 = arith.constant dense<0.000000e+00> : vector<2x8x256xf32>
    %6 = tpu.matmul %5, %2, %cst_4 {dimension_numbers = #tpu.dot_dimension_numbers<[2], [1], [1], [2], [0, 0, 0, 1, 1, 2], [0], [0]>} : vector<2x8x4xf32>, vector<2x4x256xf32>, vector<2x8x256xf32> -> vector<2x8x256xf32>
    "tpu.trace_stop"() : () -> ()
    %cst_5 = arith.constant dense<0.000000e+00> : vector<2x8xf32>
    %7 = vector.multi_reduction <add>, %6, %cst_5 [2] : vector<2x8x256xf32> to vector<2x8xf32>
    %8 = vector.shape_cast %7 : vector<2x8xf32> to vector<2x8x1xf32>
    %cst_6 = arith.constant dense<0.000000e+00> : vector<8x1xf32>
    %9 = vector.multi_reduction <add>, %8, %cst_6 [0] : vector<2x8x1xf32> to vector<8x1xf32>
    %10 = vector.shape_cast %9 : vector<8x1xf32> to vector<1x8x1xf32>
    %11 = arith.mulf %6, %6 : vector<2x8x256xf32>
    %cst_7 = arith.constant dense<0.000000e+00> : vector<2x8xf32>
    %12 = vector.multi_reduction <add>, %11, %cst_7 [2] : vector<2x8x256xf32> to vector<2x8xf32>
    %13 = vector.shape_cast %12 : vector<2x8xf32> to vector<2x8x1xf32>
    %cst_8 = arith.constant dense<0.000000e+00> : vector<8x1xf32>
    %14 = vector.multi_reduction <add>, %13, %cst_8 [0] : vector<2x8x1xf32> to vector<8x1xf32>
    %15 = vector.shape_cast %14 : vector<8x1xf32> to vector<1x8x1xf32>
    %cst_9 = arith.constant 5.120000e+02 : f32
    %16 = vector.broadcast %cst_9 : f32 to vector<1x8x1xf32>
    %17 = arith.divf %10, %16 : vector<1x8x1xf32>
    %cst_10 = arith.constant 5.120000e+02 : f32
    %18 = vector.broadcast %cst_10 : f32 to vector<1x8x1xf32>
    %19 = arith.divf %15, %18 : vector<1x8x1xf32>
    %20 = arith.mulf %17, %17 : vector<1x8x1xf32>
    %21 = arith.subf %19, %20 : vector<1x8x1xf32>
    %cst_11 = arith.constant 0.000000e+00 : f32
    %22 = vector.broadcast %cst_11 : f32 to vector<1x8x1xf32>
    %23 = arith.maximumf %21, %22 : vector<1x8x1xf32>
    %cst_12 = arith.constant 9.99999974E-6 : f32
    %24 = vector.broadcast %cst_12 : f32 to vector<1x8x1xf32>
    %25 = arith.addf %23, %24 : vector<1x8x1xf32>
    %26 = math.rsqrt %25 : vector<1x8x1xf32>
    %c0_13 = arith.constant 0 : index
    %c0_14 = arith.constant 0 : index
    %27 = vector.load %arg2[%c0_13, %c0_14] : memref<8x1xf32, #tpu.memory_space<vmem>>, vector<8x1xf32>
    %28 = vector.shape_cast %27 : vector<8x1xf32> to vector<1x8x1xf32>
    %29 = arith.mulf %28, %26 : vector<1x8x1xf32>
    %c0_15 = arith.constant 0 : index
    %c0_16 = arith.constant 0 : index
    %30 = vector.load %arg3[%c0_15, %c0_16] : memref<8x1xf32, #tpu.memory_space<vmem>>, vector<8x1xf32>
    %31 = vector.shape_cast %30 : vector<8x1xf32> to vector<1x8x1xf32>
    %32 = arith.mulf %17, %29 : vector<1x8x1xf32>
    %33 = arith.subf %31, %32 : vector<1x8x1xf32>
    %34 = vector.broadcast %29 : vector<1x8x1xf32> to vector<2x8x256xf32>
    %35 = arith.mulf %6, %34 : vector<2x8x256xf32>
    %36 = vector.broadcast %33 : vector<1x8x1xf32> to vector<2x8x256xf32>
    %37 = arith.addf %35, %36 : vector<2x8x256xf32>
    %c0_17 = arith.constant 0 : index
    %c0_18 = arith.constant 0 : index
    %c0_19 = arith.constant 0 : index
    %38 = vector.load %arg4[%c0_17, %c0_18, %c0_19] : memref<2x8x256xf32, #tpu.memory_space<vmem>>, vector<2x8x256xf32>
    tpu.vector_store %arg4[%c0_17, %c0_18, %c0_19], %37 {strides = array<i32>} : memref<2x8x256xf32, #tpu.memory_space<vmem>>, vector<2x8x256xf32>,
    return
  }
}

</mosaic_0001>

<bundles_post_ra>
// kernel: relu_conv_bn.1
= control target key start
LH: loop header
LB: loop body
LE: loop exit
PB: predicated region body
PF: predicated region fallthrough
CT: control target
= control target key end

     0   :  { %v250_v1 = vmov 0.0   ;;  %vm28_vm0 = vcmask 1043456   ;;  %vm24_vm1 = vcmask 31744   ;;  %v251_v20 = vmov 0   ;;  %s304_s0 = inlined_call_operand.vmem [shape: f32[2,4,256], index: 0, kind: input, shape index: {}]   ;;  %s305_s1 = inlined_call_operand.vmem [shape: f32[8,4], index: 1, kind: input, shape index: {}]   ;;  %s306_s2 = inlined_call_operand.vmem [shape: f32[8,1], index: 2, kind: input, shape index: {}]   ;;  %s307_s3 = inlined_call_operand.vmem [shape: f32[8,1], index: 3, kind: input, shape index: {}]   ;;  %s308_s4 = inlined_call_operand.vmem [shape: f32[2,8,256], index: 4, kind: output, shape index: {}]  }
   0x1   :  { %v17_v0 = vld [vmem:[%s304_s0] sm:$0xff]  ;;  %97 = vmatprep.mubr.f32.mxu0 %v250_v1  ;;  %v18_v2 = vld [vmem:[%s304_s0 + $0x8] sm:$0xff]  ;;  %174 = vmatprep.mubr.f32.mxu1 %v250_v1 }
   0x2   :  { %v19_v3 = vmax.f32 %v17_v0, 0.0  ;;  %v20_v4 = vmax.f32 %v18_v2, 0.0  ;;  %v21_v7 = vld [vmem:[%s305_s1] sm:$0xff]  ;;  %246 = vset.pattern.permute.xlu0 %v251_v20  ;;  %247 = vset.pattern.permute.xlu1 %v251_v20 }
   0x3   :  { %v207_v33 = vld [vmem:[%s306_s2] sm:$0xff] }
   0x4   :  { %v23_v5 = vcombine.high %v19_v3, %v19_v3  ;;  %v105_v6 = vcombine.high %v20_v4, %v20_v4  ;;  %v209_v36 = vld [vmem:[%s307_s3] sm:$0xff] }
   0x6   :  { %238 = vmatprep.subr.msk.mxu0 %vm28_vm0, %v23_v5  ;;  %241 = vmatprep.subr.msk.mxu1 %vm28_vm0, %v105_v6 }
   0x7   :  { %239 = vmatpush1.msk.msra.mxu0 %vm28_vm0, %v19_v3  ;;  %242 = vmatpush1.msk.msra.mxu1 %vm28_vm0, %v20_v4 }
   0x8   :  { %240 = vmatmul.mubr.msk.f32.vlgmr.msra.gmra.mrb[0].mxu0 %vm24_vm1, %v21_v7  ;;  %243 = vmatmul.mubr.msk.f32.vlgmr.msra.gmra.mrb[0].mxu1 %vm24_vm1, %v21_v7 }
  0xdb   :  { %v99_v8 = vpop.f32.mrb[0].mxu0  ;;  %v176_v9 = vpop.f32.mrb[0].mxu1 }
  0xdc   :  { %v101_v10 = vpop.f32.mrb[1].mxu0  ;;  %v178_v11 = vpop.f32.mrb[1].mxu1  ;;  %v188_v12 = vmul.f32 %v99_v8, %v99_v8  ;;  %v190_v13 = vmul.f32 %v176_v9, %v176_v9 }
  0xdd   :  { %v189_v14 = vmul.f32 %v101_v10, %v101_v10  ;;  %v191_v15 = vmul.f32 %v178_v11, %v178_v11  ;;  %v181_v16 = vadd.f32 %v101_v10, %v99_v8  ;;  %v184_v17 = vadd.f32 %v178_v11, %v176_v9 }
  0xdf   :  { %182 = vadd.xlane.f32.xlu0 %v181_v16  ;;  %v192_v18 = vadd.f32 %v189_v14, %v188_v12  ;;  %v195_v19 = vadd.f32 %v191_v15, %v190_v13 }
  0xe1   :  { %193 = vadd.xlane.f32.xlu1 %v192_v18 }
  0xe3   :  { %185 = vadd.xlane.f32.xlu0 %v184_v17 }
  0xe5   :  { %196 = vadd.xlane.f32.xlu1 %v195_v19 }
 0x16c   :  { %v183_v21 = vpop.xlane.xlu0 %182 }
 0x16e   :  { %v194_v22 = vpop.xlane.xlu1 %193 }
 0x170   :  { %v186_v23 = vpop.xlane.xlu0 %185 }
 0x171   :  { %v187_v24 = vadd.f32 %v186_v23, %v183_v21 }
 0x172   :  { %v197_v25 = vpop.xlane.xlu1 %196 }
 0x173   :  { %v200_v26 = vmul.f32 0.001953125, %v187_v24  ;;  %v198_v27 = vadd.f32 %v197_v25, %v194_v22 }
 0x175   :  { %v202_v28 = vmul.f32 %v200_v26, %v200_v26  ;;  %v201_v29 = vmul.f32 0.001953125, %v198_v27 }
 0x177   :  { %v203_v30 = vsub.f32 %v201_v29, %v202_v28 }
 0x179   :  { %v204_v31 = vmax.f32 %v203_v30, 0.0 }
 0x17b   :  { %v205_v32 = vadd.f32 1e-05, %v204_v31 }
 0x17d   :  { %248 = vrsqrt.f32 %v205_v32 }
 0x187   :  { %v249_v34 = vpop.eup %248 }
 0x188   :  { %v208_v35 = vmul.f32 %v249_v34, %v207_v33 }
 0x18a   :  { %214 = vperm.xlu0 %246, %v208_v35   ;;  %v210_v37 = vmul.f32 %v208_v35, %v200_v26 }
 0x18c   :  { %v211_v38 = vsub.f32 %v209_v36, %v210_v37 }
 0x18e   :  { %223 = vperm.xlu1 %247, %v211_v38  }
 0x209   :  { %v215_v39 = vpop.permute.xlu0 %214 }
 0x20a   :  { %v217_v40 = vmul.f32 %v215_v39, %v99_v8  ;;  %v218_v41 = vmul.f32 %v215_v39, %v101_v10  ;;  %v219_v42 = vmul.f32 %v215_v39, %v176_v9  ;;  %v220_v43 = vmul.f32 %v215_v39, %v178_v11 }
 0x20d   :  { %v224_v44 = vpop.permute.xlu1 %223 }
 0x20e   :  { %v226_v45 = vadd.f32 %v224_v44, %v217_v40  ;;  %v227_v46 = vadd.f32 %v224_v44, %v218_v41  ;;  %v228_v47 = vadd.f32 %v224_v44, %v219_v42  ;;  %v229_v48 = vadd.f32 %v224_v44, %v220_v43 }
 0x210   :  { %230 = vst [vmem:[%s308_s4] sm:$0xff] %v226_v45  ;;  %231 = vst [vmem:[%s308_s4 + $0x8] sm:$0xff] %v227_v46 }
 0x211   :  { %232 = vst [vmem:[%s308_s4 + $0x10] sm:$0xff] %v228_v47  ;;  %233 = vst [vmem:[%s308_s4 + $0x18] sm:$0xff] %v229_v48 }

</bundles_post_ra>
